<compile_context>
chip_gen: v7x
topology: tpu7x:2x2x1
jax: 0.10.0
libtpu: 0.0.40
codegen_flags: <defaults>
</compile_context>

<pallas_src>
import jax
import jax.numpy as jnp
from jax.experimental import pallas as pl
from jax.experimental.pallas import tpu as pltpu

_LANE = 128  # TPU lane width (last dim)


def _round_up(x, m):
    return ((x + m - 1) // m) * m


def imgtext_kernel(xi_ref, wi_ref, xw_ref, ww_ref, b_ref, o_ref, acc_ref):
    """One (i, j, k) grid step of  y = flatten(img) @ W_img + words @ W_word + b.

    xi_ref : (tm, tk) f32   image-feature tile (cast to bf16 in-kernel)
    wi_ref : (tk, tn) bf16  image-weight tile
    xw_ref : (tm, Kw) f32   word features  (same block for every j, k)
    ww_ref : (Kw, tn) f32   word weights   (same block for every k)
    b_ref  : (1,  tn) f32   b_img + b_word
    o_ref  : (tm, tn) f32   output tile (written only at the last k step)
    acc_ref: (tm, tn) f32   VMEM accumulator, resident across the k axis
    """
    k = pl.program_id(2)

    @pl.when(k == 0)
    def _init():
        acc_ref[...] = jnp.zeros_like(acc_ref)

    # Dominant GEMM: bf16 x bf16 on the MXU with f32 accumulation.  The cast
    # happens here (VPU) so no bf16 activation copy is ever materialized in HBM.
    acc_ref[...] += jnp.dot(xi_ref[...].astype(jnp.bfloat16), wi_ref[...],
                            preferred_element_type=jnp.float32)

    @pl.when(k == pl.num_programs(2) - 1)
    def _finalize():
        # Tiny word branch + bias epilogue, kept in f32 for closer parity with
        # the PyTorch f32 semantics.
        word = jnp.dot(xw_ref[...], ww_ref[...],
                       preferred_element_type=jnp.float32)
        o_ref[...] = acc_ref[...] + word + b_ref[...]


def prepare_params(w_img, b_img, w_word, b_word, *, tk_max=512, tn=None):
    """One-time parameter prep: pad to tile-aligned shapes, cast the dominant
    image weight to bf16, keep the word weight and (pre-summed) bias in f32."""
    d_img, n_cls = w_img.shape
    n_words = w_word.shape[0]

    if tn is None:
        # 256-wide N tiles feed both columns of the 2x256^2 MXUs on v6e/v7x;
        # 128 is already full MXU width on v5e and enough for small N.
        tn = 256 if _round_up(n_cls, _LANE) > _LANE else _LANE
    n_pad = _round_up(n_cls, tn)

    # Adaptive K tiling: split the 128-aligned image feature dim into the
    # fewest tiles of size <= tk_max, so K zero-padding stays < 128 rows/tile
    # (no 10%-wasted-weight-DMA fused-K padding as before).
    k128 = _round_up(d_img, _LANE)
    nk = -(-k128 // tk_max)
    tk = _round_up(-(-k128 // nk), _LANE)
    k_pad = nk * tk

    kw_pad = _round_up(n_words, _LANE)

    w_img_p = jnp.pad(w_img, ((0, k_pad - d_img), (0, n_pad - n_cls)))
    w_img_p = w_img_p.astype(jnp.bfloat16)
    w_word_p = jnp.pad(w_word.astype(jnp.float32),
                       ((0, kw_pad - n_words), (0, n_pad - n_cls)))
    b_p = (b_img + b_word).astype(jnp.float32).reshape(1, n_cls)
    b_p = jnp.pad(b_p, ((0, 0), (0, n_pad - n_cls)))

    return dict(w_img=w_img_p, w_word=w_word_p, b=b_p, tk=tk, tn=tn)


def imgtext_forward(x_img, x_word, params, num_classes, *, tm_max=128):
    """x_img: (B, C, H, W) NCHW f32; x_word: (B, n_words) f32."""
    B = x_img.shape[0]
    w_img_p, w_word_p, b_p = params["w_img"], params["w_word"], params["b"]
    tk, tn = params["tk"], params["tn"]
    k_pad, n_pad = w_img_p.shape
    kw_pad = w_word_p.shape[0]

    xi = x_img.reshape(B, -1).astype(jnp.float32)          # nn.Flatten on NCHW
    d_img = xi.shape[1]
    n_words = x_word.shape[1]

    # M padded to the bf16 sublane tile (16).  Callers should batch to >=128
    # samples to amortize the weight DMA; the pads below are no-ops then.
    tm = min(tm_max, _round_up(B, 16))
    m_pad = _round_up(B, tm)

    xi = jnp.pad(xi, ((0, m_pad - B), (0, k_pad - d_img)))              # f32
    xw = jnp.pad(x_word.astype(jnp.float32),
                 ((0, m_pad - B), (0, kw_pad - n_words)))               # f32

    gm, gn, gk = m_pad // tm, n_pad // tn, k_pad // tk

    # Double-buffered VMEM footprint estimate -> explicit scoped-VMEM limit
    # (raises v5e's 16 MiB default when tiles grow, stays <= 48 MiB for v7x).
    vmem_need = (2 * (tm * tk * 4 + tk * tn * 2 + tm * kw_pad * 4
                      + kw_pad * tn * 4 + tn * 4 + tm * tn * 4)
                 + tm * tn * 4)
    vmem_limit = int(min(48 * 2**20, max(32 * 2**20, 4 * vmem_need)))

    cost = pl.CostEstimate(
        flops=2 * m_pad * k_pad * n_pad + 2 * m_pad * kw_pad * n_pad,
        transcendentals=0,
        bytes_accessed=(m_pad * k_pad * 4 * gn        # image activations / N tile
                        + k_pad * n_pad * 2 * gm      # bf16 weights / M tile
                        + m_pad * kw_pad * 4 + kw_pad * n_pad * 4 + n_pad * 4
                        + m_pad * n_pad * 4),
    )

    out = pl.pallas_call(
        imgtext_kernel,
        out_shape=jax.ShapeDtypeStruct((m_pad, n_pad), jnp.float32),
        grid_spec=pltpu.PrefetchScalarGridSpec(
            num_scalar_prefetch=0,
            grid=(gm, gn, gk),
            in_specs=[
                pl.BlockSpec((tm, tk), lambda i, j, k: (i, k)),      # image x
                pl.BlockSpec((tk, tn), lambda i, j, k: (k, j)),      # W_img
                pl.BlockSpec((tm, kw_pad), lambda i, j, k: (i, 0)),  # word x
                pl.BlockSpec((kw_pad, tn), lambda i, j, k: (0, j)),  # W_word
                pl.BlockSpec((1, tn), lambda i, j, k: (0, j)),       # bias
            ],
            out_specs=pl.BlockSpec((tm, tn), lambda i, j, k: (i, j)),
            scratch_shapes=[pltpu.VMEM((tm, tn), jnp.float32)],
        ),
        compiler_params=pltpu.CompilerParams(
            dimension_semantics=("parallel", "parallel", "arbitrary"),
            vmem_limit_bytes=vmem_limit,
        ),
        cost_estimate=cost,
    )(xi, w_img_p, xw, w_word_p, b_p)

    # Slice away the M/N padding.
    return out[:B, :num_classes]


if __name__ == "__main__":
    # Small shapes implied by the module: batch=2, channels=4, spatial=16,
    # n_words=8, num_classes=32.
    B, C, H, W = 2, 4, 16, 16
    n_words, num_classes = 8, 32
    D_img = C * H * W

    key = jax.random.PRNGKey(0)
    k_xi, k_xw, k_wi, k_bi, k_ww, k_bw = jax.random.split(key, 6)

    x_img = jax.random.normal(k_xi, (B, C, H, W), dtype=jnp.float32)   # NCHW
    x_word = jax.random.normal(k_xw, (B, n_words), dtype=jnp.float32)

    # Deterministic synthetic parameters (shapes follow the module's __init__).
    w_img = jax.random.normal(k_wi, (D_img, num_classes), dtype=jnp.float32) * 0.02
    b_img = jax.random.normal(k_bi, (num_classes,), dtype=jnp.float32) * 0.02
    w_word = jax.random.normal(k_ww, (n_words, num_classes), dtype=jnp.float32) * 0.02
    b_word = jax.random.normal(k_bw, (num_classes,), dtype=jnp.float32) * 0.02

    params = prepare_params(w_img, b_img, w_word, b_word, tk_max=512)
    out = imgtext_forward(x_img, x_word, params, num_classes)
    out = jax.block_until_ready(out)
    assert out.shape == (B, num_classes)

    hi = jax.lax.Precision.HIGHEST

    # 1) Tight check against a bf16-matched reference (image operands rounded
    #    like the kernel, f32 accumulation, word branch + bias in f32).
    xi_bf = x_img.reshape(B, -1).astype(jnp.bfloat16).astype(jnp.float32)
    wi_bf = w_img.astype(jnp.bfloat16).astype(jnp.float32)
    ref_tight = (jnp.dot(xi_bf, wi_bf, precision=hi)
                 + jnp.dot(x_word, w_word, precision=hi)
                 + b_img + b_word)
    assert jnp.allclose(out, ref_tight, atol=1e-3, rtol=1e-3)

    # 2) Loose check against the pure-f32 module semantics (bf16 rounding of
    #    the image branch only).
    ref_f32 = (jnp.dot(x_img.reshape(B, -1), w_img, precision=hi) + b_img
               + jnp.dot(x_word, w_word, precision=hi) + b_word)
    assert jnp.allclose(out, ref_f32, atol=3e-2, rtol=3e-2)

    print("KERNEL_OK")
</pallas_src>

<mosaic_0001>
module attributes {stable_mosaic.version = 11 : i64} {
  func.func @imgtext_kernel(%arg0: i32, %arg1: i32, %arg2: i32, %arg3: memref<16x512xf32, #tpu.memory_space<vmem>>, %arg4: memref<512x128xbf16, #tpu.memory_space<vmem>>, %arg5: memref<16x128xf32, #tpu.memory_space<vmem>>, %arg6: memref<128x128xf32, #tpu.memory_space<vmem>>, %arg7: memref<1x128xf32, #tpu.memory_space<vmem>>, %arg8: memref<16x128xf32, #tpu.memory_space<vmem>>, %arg9: memref<16x128xf32, #tpu.memory_space<vmem>>) attributes {dimension_semantics = [#tpu.dimension_semantics<parallel>, #tpu.dimension_semantics<parallel>, #tpu.dimension_semantics<arbitrary>], iteration_bounds = array<i64: 1, 1, 2>, scalar_prefetch = 0 : i64, scratch_operands = 1 : i64, tpu.core_type = #tpu.core_type<tc>, window_params = [{transform_indices = @transform_0, window_bounds = array<i64: 16, 512>}, {transform_indices = @transform_1, window_bounds = array<i64: 512, 128>}, {transform_indices = @transform_2, window_bounds = array<i64: 16, 128>}, {transform_indices = @transform_3, window_bounds = array<i64: 128, 128>}, {transform_indices = @transform_4, window_bounds = array<i64: 1, 128>}, {transform_indices = @transform_5, window_bounds = array<i64: 16, 128>}]} {
    %c0_i32 = arith.constant 0 : i32
    %0 = arith.cmpi eq, %arg2, %c0_i32 : i32
    %1 = arith.extui %0 : i1 to i32
    %c0_i32_0 = arith.constant 0 : i32
    %2 = arith.cmpi ne, %1, %c0_i32_0 : i32
    scf.if %2 {
      %cst_9 = arith.constant 0.000000e+00 : f32
      %13 = vector.broadcast %cst_9 : f32 to vector<16x128xf32>
      %c0_10 = arith.constant 0 : index
      %c0_11 = arith.constant 0 : index
      %14 = vector.load %arg9[%c0_10, %c0_11] : memref<16x128xf32, #tpu.memory_space<vmem>>, vector<16x128xf32>
      tpu.vector_store %arg9[%c0_10, %c0_11], %13 {strides = array<i32>} : memref<16x128xf32, #tpu.memory_space<vmem>>, vector<16x128xf32>,
    } else {
    }
    %c0 = arith.constant 0 : index
    %c0_1 = arith.constant 0 : index
    %3 = vector.load %arg9[%c0, %c0_1] : memref<16x128xf32, #tpu.memory_space<vmem>>, vector<16x128xf32>
    %c0_2 = arith.constant 0 : index
    %c0_3 = arith.constant 0 : index
    %4 = vector.load %arg3[%c0_2, %c0_3] : memref<16x512xf32, #tpu.memory_space<vmem>>, vector<16x512xf32>
    %5 = arith.truncf %4 : vector<16x512xf32> to vector<16x512xbf16>
    %c0_4 = arith.constant 0 : index
    %c0_5 = arith.constant 0 : index
    %6 = vector.load %arg4[%c0_4, %c0_5] : memref<512x128xbf16, #tpu.memory_space<vmem>>, vector<512x128xbf16>
    %cst = arith.constant dense<0.000000e+00> : vector<16x128xf32>
    %7 = tpu.matmul %5, %6, %cst {dimension_numbers = #tpu.dot_dimension_numbers<[1], [0], [0], [1], [0, 0, 1, 1], [], []>} : vector<16x512xbf16>, vector<512x128xbf16>, vector<16x128xf32> -> vector<16x128xf32>
    %8 = arith.addf %3, %7 : vector<16x128xf32>
    %c0_6 = arith.constant 0 : index
    %c0_7 = arith.constant 0 : index
    %9 = vector.load %arg9[%c0_6, %c0_7] : memref<16x128xf32, #tpu.memory_space<vmem>>, vector<16x128xf32>
    tpu.vector_store %arg9[%c0_6, %c0_7], %8 {strides = array<i32>} : memref<16x128xf32, #tpu.memory_space<vmem>>, vector<16x128xf32>,
    %c1_i32 = arith.constant 1 : i32
    %10 = arith.cmpi eq, %arg2, %c1_i32 : i32
    %11 = arith.extui %10 : i1 to i32
    %c0_i32_8 = arith.constant 0 : i32
    %12 = arith.cmpi ne, %11, %c0_i32_8 : i32
    scf.if %12 {
      %c0_9 = arith.constant 0 : index
      %c0_10 = arith.constant 0 : index
      %13 = vector.load %arg5[%c0_9, %c0_10] : memref<16x128xf32, #tpu.memory_space<vmem>>, vector<16x128xf32>
      %c0_11 = arith.constant 0 : index
      %c0_12 = arith.constant 0 : index
      %14 = vector.load %arg6[%c0_11, %c0_12] : memref<128x128xf32, #tpu.memory_space<vmem>>, vector<128x128xf32>
      %cst_13 = arith.constant dense<0.000000e+00> : vector<16x128xf32>
      %15 = tpu.matmul %13, %14, %cst_13 {dimension_numbers = #tpu.dot_dimension_numbers<[1], [0], [0], [1], [0, 0, 1, 1], [], []>} : vector<16x128xf32>, vector<128x128xf32>, vector<16x128xf32> -> vector<16x128xf32>
      %c0_14 = arith.constant 0 : index
      %c0_15 = arith.constant 0 : index
      %16 = vector.load %arg9[%c0_14, %c0_15] : memref<16x128xf32, #tpu.memory_space<vmem>>, vector<16x128xf32>
      %17 = arith.addf %16, %15 : vector<16x128xf32>
      %c0_16 = arith.constant 0 : index
      %c0_17 = arith.constant 0 : index
      %18 = vector.load %arg7[%c0_16, %c0_17] : memref<1x128xf32, #tpu.memory_space<vmem>>, vector<1x128xf32>
      %19 = vector.broadcast %18 : vector<1x128xf32> to vector<16x128xf32>
      %20 = arith.addf %17, %19 : vector<16x128xf32>
      %c0_18 = arith.constant 0 : index
      %c0_19 = arith.constant 0 : index
      %21 = vector.load %arg8[%c0_18, %c0_19] : memref<16x128xf32, #tpu.memory_space<vmem>>, vector<16x128xf32>
      tpu.vector_store %arg8[%c0_18, %c0_19], %20 {strides = array<i32>} : memref<16x128xf32, #tpu.memory_space<vmem>>, vector<16x128xf32>,
    } else {
    }
    return
  }
  func.func @transform_0(%arg0: i32, %arg1: i32, %arg2: i32) -> (i32, i32) {
    %c0_i32 = arith.constant 0 : i32
    return %arg0, %arg2 : i32, i32
  }
  func.func @transform_1(%arg0: i32, %arg1: i32, %arg2: i32) -> (i32, i32) {
    %c0_i32 = arith.constant 0 : i32
    return %arg2, %arg1 : i32, i32
  }
  func.func @transform_2(%arg0: i32, %arg1: i32, %arg2: i32) -> (i32, i32) {
    %c0_i32 = arith.constant 0 : i32
    %c0_i32_0 = arith.constant 0 : i32
    return %arg0, %c0_i32 : i32, i32
  }
  func.func @transform_3(%arg0: i32, %arg1: i32, %arg2: i32) -> (i32, i32) {
    %c0_i32 = arith.constant 0 : i32
    %c0_i32_0 = arith.constant 0 : i32
    return %c0_i32, %arg1 : i32, i32
  }
  func.func @transform_4(%arg0: i32, %arg1: i32, %arg2: i32) -> (i32, i32) {
    %c0_i32 = arith.constant 0 : i32
    %c0_i32_0 = arith.constant 0 : i32
    return %c0_i32, %arg1 : i32, i32
  }
  func.func @transform_5(%arg0: i32, %arg1: i32, %arg2: i32) -> (i32, i32) {
    %c0_i32 = arith.constant 0 : i32
    return %arg0, %arg1 : i32, i32
  }
}

</mosaic_0001>

<bundles_post_ra>
// kernel: tpu_custom_call.1
= control target key start
LH: loop header
LB: loop body
LE: loop exit
PB: predicated region body
PF: predicated region fallthrough
CT: control target
= control target key end

     0   :  { %s1871_s0 = inlined_call_operand.hbm [shape: f32[16,1024], index: 0, kind: input, shape index: {}]   ;;  %s1872_s1 = inlined_call_operand.hbm [shape: bf16[1024,128], index: 1, kind: input, shape index: {}]   ;;  %s1873_s2 = inlined_call_operand.hbm [shape: f32[16,128], index: 2, kind: input, shape index: {}]   ;;  %s1874_s3 = inlined_call_operand.hbm [shape: f32[128,128], index: 3, kind: input, shape index: {}]   ;;  %s1875_s4 = inlined_call_operand.vmem [shape: f32[1,128], index: 4, kind: input, shape index: {}]   ;;  %s1876_s5 = inlined_call_operand.hbm [shape: f32[16,128], index: 5, kind: output, shape index: {}]  }
   0x1   :  { %1879 = sst [smem:[#allocation17_spill]] %s1871_s0 }
   0x2   :  { %1880 = sst [smem:[#allocation18_spill]] %s1873_s2 }
   0x3   :  { %1881 = sst [smem:[#allocation19_spill]] %s1874_s3 }
   0x4   :  { %10 = vsyncpa [#allocation4], 0 }
   0x5   :  { %12 = vsyncpa [#allocation4 + $0x1], 0 }
   0x6   :  { %13 = vsyncpa [#allocation7], 0 }
   0x7   :  { %15 = vsyncpa [#allocation7 + $0x1], 0 }
   0x8   :  { %16 = vsyncpa [#allocation10], 0 }
   0x9   :  { %17 = vsyncpa [#allocation5], 0  ;;  %s1557_s18 = smov 0   ;;  %s1559_s19 = smov 0  }
   0xa   :  { %s1561_s20 = smov 0   ;;  %s1563_s21 = smov 0  }
   0xb   :  { %s1565_s22 = smov 0   ;;  %s1567_s23 = smov 0  }
   0xc LB: > { %s1586_s24 = sadd.s32 4294967295, %s1510_s23   ;;  %s51_s25 = sadd.s32 1, %s1498_s20  ;;  %s1510_s23 = sphi %s1567_s23, %s23_s23   ;;  %s1506_s22 = sphi %s1565_s22, %s1898_s22   ;;  %s1502_s21 = sphi %s1563_s21, %s1897_s21   ;;  %s1498_s20 = sphi %s1561_s20, %s1896_s20   ;;  %s1494_s19 = sphi %s1559_s19, %s1895_s19   ;;  %s1490_s18 = sphi %s1557_s18, %s1894_s18  }
   0xd   : > { %p58_p0 = scmp.ne.s32.totalorder %s1498_s20, %s1494_s19  ;;  %p59_p1 = scmp.eq.s32.totalorder %s1510_s23, 0 }
   0xe   : > { %p64_p2 = scmp.ne.s32.totalorder %s1494_s19, %s1490_s18  ;;  %p1877_p3 = scmp.eq.s32.totalorder %s1586_s24, 0 }
   0xf   : > { %p60_p4 = por %p59_p1, %p58_p0  ;;  %p986_p5 = scmp.ge.s32.totalorder %s1510_s23, 1 }
  0x10   : > { %p1597_p6 = por %p1877_p3, %p64_p2  ;;  %p209_p7 = scmp.lt.s32.totalorder %s1510_s23, 3 }
  0x11   : > { %s1512_s28 = smov [#allocation8]   ;;  %p1204_p10 = scmp.lt.s32.totalorder %s1510_s23, 2 }
  0x12   : > { %s1882_s26 = scalar_select %p1597_p6, 1, 0 }
  0x13   : > { %p1602_p8 = pnand %p986_p5, %p209_p7  ;;  %s224_s29 = sshll.u32 %s1512_s28, 4  ;;  %s1606_s29 = int_to_ptr.vmem [resolvable:$true] %s224_s29 }
  0x14   : > { %p1617_p12 = pnand %p1204_p10, %p60_p4  ;;  %s1513_s7 = smov [#allocation9]  }
  0x15   : > { %p1188_p9 = pneg %p1602_p8  ;;  %s239_s8 = sshll.u32 %s1513_s7, 4  ;;  %s1621_s8 = int_to_ptr.vmem [resolvable:$true] %s239_s8 }
  0x16   : > { %s1886_s2 = sld [smem:[#allocation18_spill]] }
  0x17   : > { %p1613_p11 = pnand %p1188_p9, %p1877_p3 }
  0x19   : > { %p1304_p0 = pneg %p1613_p11 }
  0x1c   : > { %s1302_s11 = scalar_lea.hbm %s1886_s2, 256 }
  0x1d   : > { %p1303_p13 = scmp.ne.s32.totalorder %s1886_s2, %s1302_s11  ;;  %p1309_p4 = scmp.lt.u32.totalorder %s1302_s11, %s1886_s2 }
  0x1f   : > { %p1305_p1 = pnand %p1304_p0, %p1303_p13 }
  0x21   : > { %p1306_p2 = pneg %p1305_p1 }
  0x23   : > { %p1311_p5 = pnand %p1309_p4, %p1306_p2 }
  0x25   : > { %1314 = shalt.err (!%p1311_p5)
}
  0x26   : > { %s1315_s16 = scalar_lea.vmem %s1606_s29, 256  ;;  %p1323_p3 = scmp.lt.s32.totalorder %s1606_s29, %s1606_s29 }
  0x27   : > { %p1316_p7 = scmp.ne.s32.totalorder %s1606_s29, %s1315_s16  ;;  %p1324_p13 = scmp.lt.s32.totalorder %s1315_s16, %s1315_s16 }
  0x29   : > { %p1318_p9 = pnand %p1316_p7, %p1304_p0  ;;  %p1325_p1 = por %p1324_p13, %p1323_p3 }
  0x2b   : > { %p1319_p10 = pneg %p1318_p9 }
  0x2d   : > { %p1326_p6 = pnand %p1325_p1, %p1319_p10 }
  0x2f   : > { %1329 = shalt.err (!%p1326_p6)
}
  0x30   : > { %s1514_s17 = smov 128   ;;  %s1515_s18 = smov 8  }
  0x31   : > { %1191 = dma.hbm_to_vmem [thread:$0]  (!%p1613_p11), %s1886_s2, 256, %s1606_s29, [#allocation7], %s1514_s17, %s1514_s17, %s1515_s18  }
  0x32   : > { %s1887_s3 = sld [smem:[#allocation19_spill]] }
  0x38   : > { %s1330_s11 = scalar_lea.hbm %s1887_s3, 2048 }
  0x39   : > { %p1331_p3 = scmp.ne.s32.totalorder %s1887_s3, %s1330_s11  ;;  %p1337_p4 = scmp.lt.u32.totalorder %s1330_s11, %s1887_s3 }
  0x3b   : > { %p1333_p6 = pnand %p1331_p3, %p1304_p0 }
  0x3d   : > { %p1334_p2 = pneg %p1333_p6 }
  0x3f   : > { %p1339_p5 = pnand %p1337_p4, %p1334_p2 }
  0x41   : > { %1342 = shalt.err (!%p1339_p5)
}
  0x42   : > { %s1343_s29 = scalar_lea.vmem %s1621_s8, 2048  ;;  %p1351_p13 = scmp.lt.s32.totalorder %s1621_s8, %s1621_s8 }
  0x43   : > { %p1344_p7 = scmp.ne.s32.totalorder %s1621_s8, %s1343_s29  ;;  %p1352_p1 = scmp.lt.s32.totalorder %s1343_s29, %s1343_s29 }
  0x45   : > { %p1346_p9 = pnand %p1344_p7, %p1304_p0  ;;  %p1353_p3 = por %p1352_p1, %p1351_p13 }
  0x47   : > { %p1347_p10 = pneg %p1346_p9 }
  0x49   : > { %p1354_p6 = pnand %p1353_p3, %p1347_p10 }
  0x4b   : > { %1357 = shalt.err (!%p1354_p6)
}
  0x4c   : > { %1194 = dma.hbm_to_vmem [thread:$0]  (!%p1613_p11), %s1887_s3, 2048, %s1621_s8, [#allocation10], %s1514_s17, %s1514_s17, %s1515_s18  }
  0x4d   : > { %s1676_s7 = sand.u32 1, %s1498_s20   ;;  %s35_s9 = sadd.s32 1, %s1506_s22 }
  0x4e   : > { %p36_p0 = scmp.ge.s32.totalorder %s35_s9, 2  ;;  %s991_s30 = sshll.u32 %s1676_s7, 6 }
  0x4f   : > { %s1041_s10 = sshll.u32 %s1506_s22, 9  ;;  %s1888_s0 = sld [smem:[#allocation17_spill]] }
  0x50   : > { %s1900_s9 = smov (%p36_p0, %s35_s9), 0  ;;  %s263_s8 = scalar_lea.vmem [#allocation3], %s991_s30 }
  0x51   : > { %s273_s17 = sshll.u32 %s263_s8, 4  ;;  %s47_s18 = ssub.s32 %s1506_s22, %s1900_s9  ;;  %s1690_s17 = int_to_ptr.vmem [resolvable:$true] %s273_s17 }
  0x52   : > { %p49_p11 = scmp.eq.s32.totalorder %s47_s18, 0  ;;  %s260_s15 = scalar_lea.sflag [#allocation4], %s1676_s7 }
  0x53   : > { %p1360_p4 = pneg %p1617_p12 }
  0x54   : > { %s1695_s14 = scalar_select %p49_p11, %s1498_s20, %s51_s25  }
  0x55   : > { %s1686_s13 = scalar_lea.hbm %s1888_s0, %s1041_s10  ;;  %s1363_s30 = scalar_lea.hbm %s1888_s0, 2048 }
  0x56   : > { %s1358_s29 = scalar_lea.hbm %s1686_s13, 1024  ;;  %p1364_p9 = scmp.lt.u32.totalorder %s1686_s13, %s1888_s0 }
  0x57   : > { %p1359_p2 = scmp.ne.s32.totalorder %s1686_s13, %s1358_s29  ;;  %p1365_p10 = scmp.lt.u32.totalorder %s1363_s30, %s1358_s29 }
  0x58   : > { %p1367_p1 = scmp.lt.u32.totalorder %s1358_s29, %s1686_s13 }
  0x59   : > { %p1361_p5 = pnand %p1360_p4, %p1359_p2  ;;  %p1366_p13 = por %p1365_p10, %p1364_p9 }
  0x5b   : > { %p1362_p7 = pneg %p1361_p5  ;;  %p1368_p3 = por %p1367_p1, %p1366_p13 }
  0x5d   : > { %p1369_p6 = pnand %p1368_p3, %p1362_p7 }
  0x5f   : > { %1372 = shalt.err (!%p1369_p6)
}
  0x60   : > { %s1373_s25 = scalar_lea.vmem %s1690_s17, 1024  ;;  %s1516_s12 = smov [#allocation3]  }
  0x61   : > { %p1374_p0 = scmp.ne.s32.totalorder %s1690_s17, %s1373_s25  ;;  %s1378_s8 = sshll.u32 %s1516_s12, 4  ;;  %s1379_s8 = int_to_ptr.vmem [resolvable:$false] %s1378_s8 }
  0x62   : > { %s1380_s18 = scalar_lea.vmem %s1379_s8, 2048  ;;  %p1381_p5 = scmp.lt.s32.totalorder %s1690_s17, %s1379_s8 }
  0x63   : > { %p1376_p11 = pnand %p1374_p0, %p1360_p4  ;;  %p1382_p9 = scmp.lt.s32.totalorder %s1380_s18, %s1373_s25 }
  0x65   : > { %p1377_p2 = pneg %p1376_p11  ;;  %p1383_p10 = por %p1382_p9, %p1381_p5 }
  0x67   : > { %p1384_p13 = pnand %p1383_p10, %p1377_p2 }
  0x69   : > { %1387 = shalt.err (!%p1384_p13)
}
  0x6a   : > { %s1517_s29 = smov 1024   ;;  %s1518_s16 = smov 512  }
  0x6b   : > { %s1519_s28 = smov 32   ;;  %s283_s30 = sand.u32 1, %s1510_s23  }
  0x6c   : > { %1198 = dma.hbm_to_vmem [thread:$0]  (!%p1617_p12), %s1686_s13, 1024, %s1690_s17, %s260_s15, %s1517_s29, %s1518_s16, %s1519_s28  }
  0x6d   : > { %s994_s10 = sshll.u32 %s1676_s7, 8  ;;  %s1042_s11 = sshll.u32 %s1506_s22, 12 }
  0x6e   : > { %s287_s25 = scalar_lea.vmem [#allocation6], %s994_s10  ;;  %s1731_s0 = scalar_lea.hbm %s1872_s1, %s1042_s11 }
  0x6f   : > { %s295_s12 = sshll.u32 %s287_s25, 4  ;;  %s1735_s2 = scalar_lea.sflag [#allocation7], %s283_s30  ;;  %s1733_s12 = int_to_ptr.vmem [resolvable:$true] %s295_s12 }
  0x70   : > { %s1388_s3 = scalar_lea.hbm %s1731_s0, 4096  ;;  %s1393_s17 = scalar_lea.hbm %s1872_s1, 8192 }
  0x71   : > { %p1389_p7 = scmp.ne.s32.totalorder %s1731_s0, %s1388_s3  ;;  %p1394_p6 = scmp.lt.u32.totalorder %s1731_s0, %s1872_s1 }
  0x72   : > { %p1395_p0 = scmp.lt.u32.totalorder %s1393_s17, %s1388_s3  ;;  %p1397_p2 = scmp.lt.u32.totalorder %s1388_s3, %s1731_s0 }
  0x73   : > { %p1391_p1 = pnand %p1389_p7, %p1360_p4 }
  0x74   : > { %p1396_p11 = por %p1395_p0, %p1394_p6 }
  0x75   : > { %p1392_p3 = pneg %p1391_p1 }
  0x76   : > { %p1398_p5 = por %p1397_p2, %p1396_p11 }
  0x78   : > { %p1399_p9 = pnand %p1398_p5, %p1392_p3 }
  0x7a   : > { %1402 = shalt.err (!%p1399_p9)
}
  0x7b   : > { %s1403_s16 = scalar_lea.vmem %s1733_s12, 4096  ;;  %s1520_s28 = smov [#allocation6]  }
  0x7c   : > { %p1404_p10 = scmp.ne.s32.totalorder %s1733_s12, %s1403_s16  ;;  %s1408_s30 = sshll.u32 %s1520_s28, 4  ;;  %s1409_s30 = int_to_ptr.vmem [resolvable:$false] %s1408_s30 }
  0x7d   : > { %s1410_s10 = scalar_lea.vmem %s1409_s30, 8192  ;;  %p1411_p1 = scmp.lt.s32.totalorder %s1733_s12, %s1409_s30 }
  0x7e   : > { %p1406_p13 = pnand %p1404_p10, %p1360_p4  ;;  %p1412_p6 = scmp.lt.s32.totalorder %s1410_s10, %s1403_s16 }
  0x80   : > { %p1407_p7 = pneg %p1406_p13  ;;  %p1413_p0 = por %p1412_p6, %p1411_p1 }
  0x82   : > { %p1414_p11 = pnand %p1413_p0, %p1407_p7 }
  0x84   : > { %1417 = shalt.err (!%p1414_p11)
}
  0x85   : > { %s1521_s3 = smov 64   ;;  %s1522_s11 = smov 4  }
  0x86   : > { %1201 = dma.hbm_to_vmem [thread:$0]  (!%p1617_p12), %s1731_s0, 4096, %s1733_s12, %s1735_s2, %s1521_s3, %s1521_s3, %s1522_s11  }
  0x87   : > { %307 = sbr.rel (%p1602_p8) target bundleno = 651 (0x28b), region = 40  ;;  %s309_s25 = sand.u32 (!%p1602_p8), 1, %s1494_s19  }
  0x88   : > { %s998_s8 = sshll.u32 (!%p1602_p8), %s309_s25, 6  ;;  %s310_s18 = scalar_lea.sflag (!%p1602_p8), [#allocation4], %s309_s25 }
  0x89   : > { %s1764_s7 = scalar_lea.vmem (!%p1602_p8), [#allocation3], %s998_s8  ;;  %p1889_p4 = scmp.ne.s32.totalorder (!%p1602_p8), %s1882_s26, 0 }
  0x8e   : > { %1469 = dma.done.wait (%p1889_p4), %s310_s18, 1024  }
  0x8f   : > { %1471 = vsyncadd (%p1889_p4), %s310_s18, 4294966272  ;;  %s318_s13 = sand.u32 1, %s1586_s24   ;;  %s999_s6 = sshll.u32 %s309_s25, 8 }
  0x90   : > { %s319_s0 = scalar_lea.sflag [#allocation7], %s318_s13  ;;  %s1771_s2 = scalar_lea.vmem [#allocation6], %s999_s6 }
  0x91   : > { %1473 = dma.done.wait (%p1889_p4), %s319_s0, 4096  }
  0x92   : > { %1475 = vsyncadd (%p1889_p4), %s319_s0, 4294963200  ;;  %p1890_p8 = scmp.eq.s32.totalorder %s1586_s24, 0 }
  0x94   : > { %1477 = dma.done.wait (%p1890_p8), [#allocation7], 256   ;;  %p1891_p12 = pmov %p1890_p8 }
  0x95   : > { %p1892_p3 = pmov %p1890_p8 }
  0x96   : > { %1479 = vsyncadd (%p1891_p12), [#allocation7], 4294967040 }
  0x97   : > { %1481 = dma.done.wait (%p1892_p3), [#allocation10], 2048   ;;  %p1893_p2 = pmov %p1892_p3 }
  0x98   : > { %p1002_p5 = scmp.ne.s32.totalorder %s1502_s21, 0 }
  0x99   : > { %1483 = vsyncadd (%p1893_p2), [#allocation10], 4294965248  ;;  %v1523_v0 = vmov (!%p1002_p5), 0.0  }
  0x9a   : > { %372 = sbr.rel (%p1002_p5) target bundleno = 161 (0xa1), region = 60  ;;  %373 = vst [vmem:[#allocation2] sm:$0xff] (!%p1002_p5), %v1523_v0  ;;  %374 = vst [vmem:[#allocation2 + $0x8] sm:$0xff] (!%p1002_p5), %v1523_v0 }
  0xa1 PF: > { %v1270_v1 = vld [vmem:[%s1771_s2 + $0x40] sm:$0xff]   ;;  %v1274_v5 = vld [vmem:[%s1771_s2 + $0x48] sm:$0xff]   ;;  %v1278_v9 = vld [vmem:[%s1771_s2 + $0x50] sm:$0xff]   ;;  %p1035_p9 = scmp.ne.s32.totalorder %s1502_s21, 1 }
  0xa2   : > { %v1271_v2 = vld [vmem:[%s1771_s2 + $0xc0] sm:$0xff]   ;;  %1043 = vmatprep.subr.bf16.mxu0 %v1270_v1  ;;  %v1275_v6 = vld [vmem:[%s1771_s2 + $0xc8] sm:$0xff]   ;;  %v1279_v10 = vld [vmem:[%s1771_s2 + $0xd0] sm:$0xff]  }
  0xa3   : > { %v1272_v3 = vld [vmem:[%s1771_s2] sm:$0xff]   ;;  %1065 = vmatprep.subr.bf16.mxu1 %v1271_v2  ;;  %v1276_v7 = vld [vmem:[%s1771_s2 + $0x8] sm:$0xff]   ;;  %v1280_v11 = vld [vmem:[%s1771_s2 + $0x10] sm:$0xff]  }
  0xa4   : > { %v1273_v4 = vld [vmem:[%s1771_s2 + $0x80] sm:$0xff]   ;;  %1044 = vmatpush3.bf16.msra.mxu0 %v1272_v3  ;;  %v1277_v8 = vld [vmem:[%s1771_s2 + $0x88] sm:$0xff]   ;;  %v1281_v12 = vld [vmem:[%s1771_s2 + $0x90] sm:$0xff]  }
  0xa5   : > { %1066 = vmatpush3.bf16.msra.mxu1 %v1273_v4  ;;  %1045 = vmatprep.subr.bf16.mxu0 %v1274_v5  ;;  %v1282_v13 = vld [vmem:[%s1771_s2 + $0x58] sm:$0xff]   ;;  %v1286_v17 = vld [vmem:[%s1771_s2 + $0x60] sm:$0xff]   ;;  %v1290_v21 = vld [vmem:[%s1771_s2 + $0x68] sm:$0xff]  }
  0xa6   : > { %1067 = vmatprep.subr.bf16.mxu1 %v1275_v6  ;;  %v1283_v14 = vld [vmem:[%s1771_s2 + $0xd8] sm:$0xff]   ;;  %v1287_v18 = vld [vmem:[%s1771_s2 + $0xe0] sm:$0xff]   ;;  %v1291_v22 = vld [vmem:[%s1771_s2 + $0xe8] sm:$0xff]  }
  0xa7   : > { %v1284_v15 = vld [vmem:[%s1771_s2 + $0x18] sm:$0xff]   ;;  %v1288_v19 = vld [vmem:[%s1771_s2 + $0x20] sm:$0xff]   ;;  %v1292_v23 = vld [vmem:[%s1771_s2 + $0x28] sm:$0xff]  }
  0xa8   : > { %1046 = vmatpush3.bf16.msra.mxu0 %v1276_v7  ;;  %v1285_v16 = vld [vmem:[%s1771_s2 + $0x98] sm:$0xff]   ;;  %v1289_v20 = vld [vmem:[%s1771_s2 + $0xa0] sm:$0xff]   ;;  %v1293_v24 = vld [vmem:[%s1771_s2 + $0xa8] sm:$0xff]  }
  0xa9   : > { %1068 = vmatpush3.bf16.msra.mxu1 %v1277_v8  ;;  %1047 = vmatprep.subr.bf16.mxu0 %v1278_v9  ;;  %v1294_v25 = vld [vmem:[%s1771_s2 + $0x70] sm:$0xff]   ;;  %v1298_v29 = vld [vmem:[%s1771_s2 + $0x78] sm:$0xff]   ;;  %v378_v33 = vld [vmem:[%s1764_s7 + $0x8] sm:$0xff] }
  0xaa   : > { %1069 = vmatprep.subr.bf16.mxu1 %v1279_v10  ;;  %v1295_v26 = vld [vmem:[%s1771_s2 + $0xf0] sm:$0xff]   ;;  %v1299_v30 = vld [vmem:[%s1771_s2 + $0xf8] sm:$0xff]   ;;  %v382_v34 = vld [vmem:[%s1764_s7 + $0x28] sm:$0xff] }
  0xab   : > { %v1296_v27 = vld [vmem:[%s1771_s2 + $0x30] sm:$0xff]   ;;  %v1300_v31 = vld [vmem:[%s1771_s2 + $0x38] sm:$0xff]   ;;  %v386_v36 = vpack.c.bf16 %v382_v34, %v378_v33  ;;  %v377_v38 = vld [vmem:[%s1764_s7] sm:$0xff] }
  0xac   : > { %1048 = vmatpush3.bf16.msra.mxu0 %v1280_v11  ;;  %v1297_v28 = vld [vmem:[%s1771_s2 + $0xb0] sm:$0xff]   ;;  %v1301_v32 = vld [vmem:[%s1771_s2 + $0xb8] sm:$0xff]   ;;  %v381_v39 = vld [vmem:[%s1764_s7 + $0x20] sm:$0xff] }
  0xad   : > { %1070 = vmatpush3.bf16.msra.mxu1 %v1281_v12  ;;  %1049 = vmatprep.subr.bf16.mxu0 %v1282_v13  ;;  %v380_v35 = vld [vmem:[%s1764_s7 + $0x18] sm:$0xff]  ;;  %v385_v41 = vpack.c.bf16 %v381_v39, %v377_v38  ;;  %v379_v42 = vld [vmem:[%s1764_s7 + $0x10] sm:$0xff]  ;;  %v739_v1 = vld [vmem:[#allocation9 + $0x10] sm:$0xff] (!%p1035_p9) }
  0xae   : > { %1071 = vmatprep.subr.bf16.mxu1 %v1283_v14  ;;  %v384_v37 = vld [vmem:[%s1764_s7 + $0x38] sm:$0xff]  ;;  %v383_v43 = vld [vmem:[%s1764_s7 + $0x30] sm:$0xff]  ;;  %677 = vmatprep.mubr.bf16.mxu0 %v386_v36  ;;  %v740_v3 = vld [vmem:[#allocation9 + $0x18] sm:$0xff] (!%p1035_p9) }
  0xaf   : > { %v388_v40 = vpack.c.bf16 %v384_v37, %v380_v35  ;;  %v387_v44 = vpack.c.bf16 %v383_v43, %v379_v42  ;;  %v375_v54 = vld [vmem:[#allocation2] sm:$0xff]  ;;  %v376_v59 = vld [vmem:[#allocation2 + $0x8] sm:$0xff]  ;;  %v1144_v4 = vpack.c.bf16 (!%p1035_p9), %v740_v3, %v739_v1  ;;  %v735_v8 = vld [vmem:[#allocation8] sm:$0xff] (!%p1035_p9) }
  0xb0   : > { %1050 = vmatpush3.bf16.msra.mxu0 %v1284_v15  ;;  %v737_v63 = vld [vmem:[#allocation9] sm:$0xff] (!%p1035_p9)  ;;  %v738_v0 = vld [vmem:[#allocation9 + $0x8] sm:$0xff] (!%p1035_p9)  ;;  %v743_v9 = vld [vmem:[#allocation9 + $0x30] sm:$0xff] (!%p1035_p9) }
  0xb1   : > { %1072 = vmatpush3.bf16.msra.mxu1 %v1285_v16  ;;  %1051 = vmatprep.subr.bf16.mxu0 %v1286_v17  ;;  %v1140_v2 = vpack.c.bf16 (!%p1035_p9), %v738_v0, %v737_v63  ;;  %v741_v5 = vld [vmem:[#allocation9 + $0x20] sm:$0xff] (!%p1035_p9)  ;;  %v742_v6 = vld [vmem:[#allocation9 + $0x28] sm:$0xff] (!%p1035_p9)  ;;  %v744_v10 = vld [vmem:[#allocation9 + $0x38] sm:$0xff] (!%p1035_p9) }
  0xb2   : > { %1073 = vmatprep.subr.bf16.mxu1 %v1287_v18  ;;  %718 = vmatprep.mubr.bf16.mxu1 %v388_v40  ;;  %v1148_v7 = vpack.c.bf16 (!%p1035_p9), %v742_v6, %v741_v5  ;;  %v1152_v11 = vpack.c.bf16 (!%p1035_p9), %v744_v10, %v743_v9  ;;  %v745_v12 = vld [vmem:[#allocation9 + $0x40] sm:$0xff] (!%p1035_p9)  ;;  %v746_v13 = vld [vmem:[#allocation9 + $0x48] sm:$0xff] (!%p1035_p9)  ;;  %v747_v15 = vld [vmem:[#allocation9 + $0x50] sm:$0xff] (!%p1035_p9) }
  0xb3   : > { %v1156_v14 = vpack.c.bf16 (!%p1035_p9), %v746_v13, %v745_v12  ;;  %v748_v16 = vld [vmem:[#allocation9 + $0x58] sm:$0xff] (!%p1035_p9)  ;;  %v749_v18 = vld [vmem:[#allocation9 + $0x60] sm:$0xff] (!%p1035_p9) }
  0xb4   : > { %1052 = vmatpush3.bf16.msra.mxu0 %v1288_v19  ;;  %v1160_v17 = vpack.c.bf16 (!%p1035_p9), %v748_v16, %v747_v15  ;;  %v750_v19 = vld [vmem:[#allocation9 + $0x68] sm:$0xff] (!%p1035_p9) }
  0xb5   : > { %1074 = vmatpush3.bf16.msra.mxu1 %v1289_v20  ;;  %1053 = vmatprep.subr.bf16.mxu0 %v1290_v21  ;;  %v1164_v20 = vpack.c.bf16 (!%p1035_p9), %v750_v19, %v749_v18  ;;  %v751_v21 = vld [vmem:[#allocation9 + $0x70] sm:$0xff] (!%p1035_p9) }
  0xb6   : > { %1075 = vmatprep.subr.bf16.mxu1 %v1291_v22  ;;  %v752_v22 = vld [vmem:[#allocation9 + $0x78] sm:$0xff] (!%p1035_p9) }
  0xb8   : > { %1054 = vmatpush3.bf16.msra.mxu0 %v1292_v23  ;;  %v1168_v23 = vpack.c.bf16 (!%p1035_p9), %v752_v22, %v751_v21 }
  0xb9   : > { %1076 = vmatpush3.bf16.msra.mxu1 %v1293_v24  ;;  %1055 = vmatprep.subr.bf16.mxu0 %v1294_v25  ;;  %v736_v24 = vld [vmem:[#allocation8 + $0x8] sm:$0xff] (!%p1035_p9) }
  0xba   : > { %1077 = vmatprep.subr.bf16.mxu1 %v1295_v26 }
  0xbc   : > { %1056 = vmatpush3.bf16.msra.mxu0 %v1296_v27 }
  0xbd   : > { %1078 = vmatpush3.bf16.msra.mxu1 %v1297_v28  ;;  %1057 = vmatprep.subr.bf16.mxu0 %v1298_v29  ;;  %v1036_v28 = vld [vmem:[%s1875_s4] ss:$0 sm:$0xff] (!%p1035_p9) }
  0xbe   : > { %1079 = vmatprep.subr.bf16.mxu1 %v1299_v30 }
  0xc0   : > { %1058 = vmatpush3.bf16.msra.mxu0 %v1300_v31 }
  0xc1   : > { %1080 = vmatpush3.bf16.msra.mxu1 %v1301_v32  ;;  %1141 = vmatprep.subr.bf16.mxu0 (!%p1035_p9), %v1140_v2 }
  0xc3   : > { %678 = vmatmul.mubr.bf16.vlgmr.msra.gmra.mrb[0].mxu0 %v385_v41 }
  0xc4   : > { %719 = vmatmul.mubr.bf16.vlgmr.msra.gmra.mrb[0].mxu1 %v387_v44  ;;  %1143 = vmatpush3.bf16.msra.mxu0 (!%p1035_p9), %v1140_v2 }
  0xc5   : > { %1145 = vmatprep.subr.bf16.mxu0 (!%p1035_p9), %v1144_v4  ;;  %1137 = vmatprep.mubr.f32.mxu0 (!%p1035_p9), %v735_v8 }
  0xc8   : > { %1147 = vmatpush3.bf16.msra.mxu0 (!%p1035_p9), %v1144_v4 }
  0xc9   : > { %1149 = vmatprep.subr.bf16.mxu0 (!%p1035_p9), %v1148_v7 }
  0xcc   : > { %1151 = vmatpush3.bf16.msra.mxu0 (!%p1035_p9), %v1148_v7 }
  0xcd   : > { %1153 = vmatprep.subr.bf16.mxu0 (!%p1035_p9), %v1152_v11 }
  0xd0   : > { %1155 = vmatpush3.bf16.msra.mxu0 (!%p1035_p9), %v1152_v11 }
  0xd1   : > { %1157 = vmatprep.subr.bf16.mxu0 (!%p1035_p9), %v1156_v14 }
  0xd4   : > { %1159 = vmatpush3.bf16.msra.mxu0 (!%p1035_p9), %v1156_v14 }
  0xd5   : > { %1161 = vmatprep.subr.bf16.mxu0 (!%p1035_p9), %v1160_v17 }
  0xd8   : > { %1163 = vmatpush3.bf16.msra.mxu0 (!%p1035_p9), %v1160_v17 }
  0xd9   : > { %1165 = vmatprep.subr.bf16.mxu0 (!%p1035_p9), %v1164_v20 }
  0xdc   : > { %1167 = vmatpush3.bf16.msra.mxu0 (!%p1035_p9), %v1164_v20 }
  0xdd   : > { %1169 = vmatprep.subr.bf16.mxu0 (!%p1035_p9), %v1168_v23 }
  0xe0   : > { %1171 = vmatpush3.bf16.msra.mxu0 (!%p1035_p9), %v1168_v23 }
 0x196   : > { %v1059_v45 = vpop.f32.mrb[0].mxu0 }
 0x197   : > { %v1081_v46 = vpop.f32.mrb[0].mxu1  ;;  %v1060_v47 = vpop.f32.mrb[1].mxu0  ;;  %1138 = vmatmul.mubr.f32.vlgmr.msra.gmra.mrb[0].mxu0 (!%p1035_p9), %v736_v24 }
 0x198   : > { %v1061_v48 = vadd.f32 %v1060_v47, %v1059_v45  ;;  %v1082_v49 = vpop.f32.mrb[1].mxu1  ;;  %v1062_v50 = vpop.f32.mrb[2].mxu0 }
 0x199   : > { %v1083_v51 = vadd.f32 %v1082_v49, %v1081_v46  ;;  %v1084_v52 = vpop.f32.mrb[2].mxu1  ;;  %v1063_v53 = vpop.f32.mrb[3].mxu0 }
 0x19a   : > { %v1064_v55 = vadd.f32 %v1063_v53, %v1062_v50  ;;  %v1085_v56 = vpop.f32.mrb[3].mxu1 }
 0x19b   : > { %v721_v57 = vadd.f32 %v1083_v51, %v1061_v48  ;;  %v1086_v58 = vadd.f32 %v1085_v56, %v1084_v52  ;;  %734 = sbr.rel (%p1035_p9) target bundleno = 625 (0x271), region = 64 }
 0x19d   : > { %v727_v60 = vadd.f32 %v721_v57, %v375_v54  ;;  %v724_v61 = vadd.f32 %v1086_v58, %v1064_v55 }
 0x19f   : > { %729 = vst [vmem:[#allocation2] sm:$0xff] %v727_v60  ;;  %v728_v62 = vadd.f32 %v724_v61, %v376_v59 }
 0x1a1   : > { %730 = vst [vmem:[#allocation2 + $0x8] sm:$0xff] %v728_v62 }
 0x1a6   : > { %v828_v26 = vld [vmem:[#allocation2] sm:$0xff] }
 0x1a8   : > { %v829_v25 = vld [vmem:[#allocation2 + $0x8] sm:$0xff] }
 0x26a   : > { %v1139_v27 = vpop.f32.mrb[0].mxu0 }
 0x26b   : > { %v831_v29 = vadd.f32 %v1139_v27, %v829_v25  ;;  %v819_v30 = vpop.f32.mrb[1].mxu0 }
 0x26c   : > { %v830_v31 = vadd.f32 %v828_v26, %v819_v30 }
 0x26d   : > { %v840_v32 = vadd.f32 %v1036_v28, %v831_v29 }
 0x26e   : > { %v839_v33 = vadd.f32 %v1036_v28, %v830_v31 }
 0x26f   : > { %842 = vst [vmem:[#allocation11 + $0x8] sm:$0xff] %v840_v32 }
 0x270   : > { %841 = vst [vmem:[#allocation11] sm:$0xff] %v839_v33 }
 0x271 PF: > { %p1207_p10 = scmp.eq.s32.totalorder %s1586_s24, 1  ;;  %s1524_s27 = smov [#allocation11]  }
 0x272   : > { %s853_s12 = sshll.u32 %s1524_s27, 4  ;;  %s854_s12 = int_to_ptr.vmem [resolvable:$true] %s853_s12 }
 0x273   : > { %s1418_s17 = scalar_lea.vmem %s854_s12, 256  ;;  %p1425_p6 = scmp.lt.s32.totalorder %s854_s12, %s854_s12 }
 0x274   : > { %p1419_p13 = scmp.ne.s32.totalorder %s854_s12, %s1418_s17  ;;  %p1426_p0 = scmp.lt.s32.totalorder %s1418_s17, %s1418_s17 }
 0x276   : > { %p1420_p7 = pnand %p1419_p13, %p1207_p10  ;;  %p1427_p11 = por %p1426_p0, %p1425_p6 }
 0x278   : > { %p1421_p1 = pneg %p1420_p7 }
 0x27a   : > { %p1428_p4 = pnand %p1427_p11, %p1421_p1 }
 0x27c   : > { %1431 = shalt.err (!%p1428_p4)
}
 0x27d   : > { %s1432_s16 = scalar_lea.hbm %s1876_s5, 256 }
 0x27e   : > { %p1433_p8 = scmp.ne.s32.totalorder %s1876_s5, %s1432_s16  ;;  %p1438_p2 = scmp.lt.u32.totalorder %s1432_s16, %s1876_s5 }
 0x280   : > { %p1434_p12 = pnand %p1433_p8, %p1207_p10 }
 0x282   : > { %p1435_p3 = pneg %p1434_p12 }
 0x284   : > { %p1440_p5 = pnand %p1438_p2, %p1435_p3 }
 0x286   : > { %1443 = shalt.err (!%p1440_p5)
}
 0x287   : > { %s1525_s11 = smov 128   ;;  %s1526_s25 = smov 8  }
 0x288   : > { %1185 = dma.vmem_to_hbm [thread:$0]  (%p1207_p10), %s854_s12, 256, %s1876_s5, [#allocation5], %s1525_s11, %s1525_s11, %s1526_s25  }
 0x289   : > { %1485 = dma.done.wait (%p1207_p10), [#allocation5], 256  }
 0x28a   : > { %1487 = vsyncadd (%p1207_p10), [#allocation5], 4294967040 }
 0x28b PF: > { %s23_s23 = sadd.s32 1, %s1510_s23   ;;  %s1894_s18 = smov %s1494_s19 }
 0x28c   : > { %p20_p9 = scmp.ge.s32.totalorder %s23_s23, 4   ;;  %s1895_s19 = smov %s1498_s20 }
 0x28d   : > { %s1896_s20 = smov %s1695_s14  ;;  %s1897_s21 = smov %s1506_s22 }
 0x28e   : > { %s1898_s22 = smov %s1900_s9  ;;  %22 = sbr.rel (!%p20_p9) target bundleno = 12 (0xc), region = 112 }
 0x295   :  { %869 = vsyncpa [#allocation4], 1 }
 0x296   :  { %871 = vsyncpa [#allocation4 + $0x1], 1 }
 0x297   :  { %872 = vsyncpa [#allocation7], 1 }
 0x298   :  { %874 = vsyncpa [#allocation7 + $0x1], 1 }
 0x299   :  { %875 = vsyncpa [#allocation10], 1 }
 0x29a   :  { %876 = vsyncpa [#allocation5], 1 }
 0x29b   :  { %878 = vsyncpa [#allocation5 + $0x1], 1 }

</bundles_post_ra>
